<compile_context>
chip_gen: v5e
topology: v5e:2x2
jax: 0.10.0
libtpu: 0.0.40
codegen_flags: <defaults>
</compile_context>

<pallas_src>
import functools

import jax
import jax.numpy as jnp
from jax.experimental import pallas as pl
from jax.experimental.pallas import tpu as pltpu


def _round_up(x, m):
    return (x + m - 1) // m * m


# ---------------------------------------------------------------------------
# Pallas kernel: encoder -> reparameterize -> decoder for one batch tile.
# ---------------------------------------------------------------------------
def _smvae_kernel(latent_size,
                  x_ref, eps_ref,
                  ew1_ref, eb1_ref, ew2_ref, eb2_ref,
                  wh_ref, bh_ref,
                  dw1_ref, db1_ref, dw2_ref, db2_ref, dwo_ref, dbo_ref,
                  xrec_ref, muvar_ref):
    f32 = jnp.float32
    bf16 = jnp.bfloat16
    L = latent_size

    x = x_ref[...]                                   # (TB, in), bf16

    # ---- encoder (bf16 MXU operands, f32 accumulation) ----
    h = jnp.dot(x, ew1_ref[...], preferred_element_type=f32) + eb1_ref[...]
    h = jnp.maximum(h, 0.0).astype(bf16)
    h = jnp.dot(h, ew2_ref[...], preferred_element_type=f32) + eb2_ref[...]
    h = jnp.maximum(h, 0.0).astype(bf16)

    # fused mu|logvar heads: single (h2, 2L) matmul instead of two tiny ones
    heads = jnp.dot(h, wh_ref[...], preferred_element_type=f32) + bh_ref[...]
    std_full = jnp.exp(0.5 * heads)                  # (TB, 2L); right half is var

    mu = heads[:, :L]                                # (TB, L) f32
    var = std_full[:, L:]                            # std-dev ("var" in module)

    # packed [mu | var] via lane-select (no lane-concatenate / XLU shuffle)
    lane = jax.lax.broadcasted_iota(jnp.int32, heads.shape, 1)
    muvar_ref[...] = jnp.where(lane < L, heads, std_full)

    # ---- reparameterize: Normal(mu, var).rsample() == mu + var * eps ----
    rep = mu + var * eps_ref[...]                    # (TB, L) f32
    c = jnp.exp(rep[:, L - 1:L])                     # (TB, 1)

    # ---- decoder ----
    # dw1 has one extra zero input row, so feeding the full rep tile equals
    # z @ dw1 (z = rep[:, :L-1]) without an unaligned lane slice.
    d = jnp.dot(rep.astype(bf16), dw1_ref[...],
                preferred_element_type=f32) + db1_ref[...]
    d = jnp.maximum(d, 0.0).astype(bf16)
    d = jnp.dot(d, dw2_ref[...], preferred_element_type=f32) + db2_ref[...]
    d = jnp.maximum(d, 0.0).astype(bf16)
    logits = jnp.dot(d, dwo_ref[...], preferred_element_type=f32) + dbo_ref[...]

    # sigmoid via EUP exp + approx reciprocal (EUP slot is otherwise idle)
    x_recon = pl.reciprocal(1.0 + jnp.exp(-logits), approx=True)
    xrec_ref[...] = jnp.minimum(x_recon * c, 1.0)


# ---------------------------------------------------------------------------
# Parameter setup (torch-like layout: Linear weights stored as (in, out))
# ---------------------------------------------------------------------------
def init_params(key, input_size, enc_hidden, dec_hidden, latent_size):
    """Deterministic synthetic parameters, f32, weights are (in, out)."""
    dims_enc = [input_size] + enc_hidden
    dec_latent = latent_size - 1                     # dimension_decrease=1
    dims_dec = [dec_latent] + dec_hidden + [input_size]

    params = {}
    keys = jax.random.split(key, 8)
    ki = iter(range(8))

    def lin(k, fan_in, fan_out):
        scale = 1.0 / jnp.sqrt(jnp.float32(fan_in))
        w = jax.random.uniform(k, (fan_in, fan_out), jnp.float32, -scale, scale)
        b = jnp.zeros((1, fan_out), jnp.float32) + 0.01
        return w, b

    params["ew1"], params["eb1"] = lin(keys[next(ki)], dims_enc[0], dims_enc[1])
    params["ew2"], params["eb2"] = lin(keys[next(ki)], dims_enc[1], dims_enc[2])
    params["wm"], params["bm"] = lin(keys[next(ki)], dims_enc[2], latent_size)
    params["wv"], params["bv"] = lin(keys[next(ki)], dims_enc[2], latent_size)
    params["dw1"], params["db1"] = lin(keys[next(ki)], dims_dec[0], dims_dec[1])
    params["dw2"], params["db2"] = lin(keys[next(ki)], dims_dec[1], dims_dec[2])
    params["dwo"], params["dbo"] = lin(keys[next(ki)], dims_dec[2], dims_dec[3])
    return params


def prepare_kernel_params(params, latent_size):
    """Fuse heads, zero-pad dw1, cast matmul weights to bf16 (biases stay f32)."""
    bf16 = jnp.bfloat16
    wh = jnp.concatenate([params["wm"], params["wv"]], axis=1).astype(bf16)
    bh = jnp.concatenate([params["bm"], params["bv"]], axis=1)          # f32
    dw1 = jnp.concatenate(
        [params["dw1"],
         jnp.zeros((1, params["dw1"].shape[1]), jnp.float32)], axis=0
    ).astype(bf16)                                   # (latent_size, dh1)
    return dict(
        ew1=params["ew1"].astype(bf16), eb1=params["eb1"],
        ew2=params["ew2"].astype(bf16), eb2=params["eb2"],
        wh=wh, bh=bh,
        dw1=dw1, db1=params["db1"],
        dw2=params["dw2"].astype(bf16), db2=params["db2"],
        dwo=params["dwo"].astype(bf16), dbo=params["dbo"],
    )


# ---------------------------------------------------------------------------
# Wrapper: batch tiling, pallas_call plumbing
# ---------------------------------------------------------------------------
def smvae_lognormal_forward(x_img, eps, kparams, *, input_size, latent_size,
                            max_tile_b=256):
    # Flatten NCHW image to (B, input_size)  (== x.view(-1, input_size))
    x = x_img.reshape(-1, input_size)
    B = x.shape[0]

    # Batch tile: multiple of 16 (bf16 sublane packing), capped at 256
    # (fills the 256x256 MXU on v6e/v7x; 128-aligned so also fine on v5e;
    #  tile VMEM footprint is tiny, well under v7x's 32 MiB scoped default).
    TILE_B = min(max_tile_b, _round_up(B, 16))
    B_pad = _round_up(B, TILE_B)
    grid = (B_pad // TILE_B,)

    x_p = jnp.pad(x.astype(jnp.bfloat16), ((0, B_pad - B), (0, 0)))
    eps_p = jnp.pad(eps.astype(jnp.float32), ((0, B_pad - B), (0, 0)))

    weight_order = ["ew1", "eb1", "ew2", "eb2", "wh", "bh",
                    "dw1", "db1", "dw2", "db2", "dwo", "dbo"]
    weights = [kparams[k] for k in weight_order]

    def full_block(a):
        # whole-array block, constant index map -> resident across grid steps
        return pl.BlockSpec(a.shape, lambda i: (0,) * a.ndim)

    in_specs = (
        [pl.BlockSpec((TILE_B, input_size), lambda i: (i, 0)),
         pl.BlockSpec((TILE_B, latent_size), lambda i: (i, 0))]
        + [full_block(w) for w in weights]
    )
    out_specs = (
        pl.BlockSpec((TILE_B, input_size), lambda i: (i, 0)),
        pl.BlockSpec((TILE_B, 2 * latent_size), lambda i: (i, 0)),
    )
    out_shapes = (
        jax.ShapeDtypeStruct((B_pad, input_size), jnp.float32),      # x_recon
        jax.ShapeDtypeStruct((B_pad, 2 * latent_size), jnp.float32), # mu|var
    )

    # Advisory cost hint for XLA's scheduler.
    mm_keys = ["ew1", "ew2", "wh", "dw1", "dw2", "dwo"]
    flops = 2 * B_pad * sum(int(kparams[k].shape[0] * kparams[k].shape[1])
                            for k in mm_keys)
    transcendentals = B_pad * (2 * latent_size + 1 + 2 * input_size)
    bytes_accessed = (
        int(x_p.size) * 2 + int(eps_p.size) * 4
        + sum(int(w.size) * w.dtype.itemsize for w in weights)
        + B_pad * input_size * 4 + B_pad * 2 * latent_size * 4
    )

    kernel = functools.partial(_smvae_kernel, latent_size)

    x_recon_p, muvar_p = pl.pallas_call(
        kernel,
        out_shape=out_shapes,
        grid_spec=pltpu.PrefetchScalarGridSpec(
            num_scalar_prefetch=0,
            grid=grid,
            in_specs=in_specs,
            out_specs=out_specs,
        ),
        compiler_params=pltpu.CompilerParams(
            dimension_semantics=("parallel",),
            vmem_limit_bytes=32 * 1024 * 1024,
        ),
        cost_estimate=pl.CostEstimate(
            flops=flops,
            transcendentals=transcendentals,
            bytes_accessed=bytes_accessed,
        ),
    )(x_p, eps_p, *weights)

    x_recon = x_recon_p[:B]
    mu = muvar_p[:B, :latent_size]
    var = muvar_p[:B, latent_size:]
    return x_recon, mu, var


# ---------------------------------------------------------------------------
# Pure-JAX reference (f32, unfused) for a correctness check
# ---------------------------------------------------------------------------
def reference_forward(x_img, eps, params, *, input_size, latent_size):
    x = x_img.reshape(-1, input_size).astype(jnp.float32)
    h = jnp.maximum(x @ params["ew1"] + params["eb1"], 0.0)
    h = jnp.maximum(h @ params["ew2"] + params["eb2"], 0.0)
    mu = h @ params["wm"] + params["bm"]
    logvar = h @ params["wv"] + params["bv"]
    var = jnp.exp(0.5 * logvar)
    rep = mu + var * eps
    z = rep[:, :latent_size - 1]
    c = jnp.exp(rep[:, latent_size - 1:latent_size])
    d = jnp.maximum(z @ params["dw1"] + params["db1"], 0.0)
    d = jnp.maximum(d @ params["dw2"] + params["db2"], 0.0)
    x_recon = jax.nn.sigmoid(d @ params["dwo"] + params["dbo"])
    return jnp.minimum(x_recon * c, 1.0), mu, var


if __name__ == "__main__":
    # Small, module-consistent shapes:
    #   input_size=64 (images 1x8x8), enc_hidden=[128, 32],
    #   dec_hidden=[32, 128], latent_size=10, batch=8
    INPUT_SIZE = 64
    ENC_HIDDEN = [128, 32]
    DEC_HIDDEN = [32, 128]
    LATENT = 10
    BATCH = 8

    root = jax.random.PRNGKey(0)
    k_x, k_eps, k_p = jax.random.split(root, 3)

    x_img = jax.random.uniform(k_x, (BATCH, 1, 8, 8), jnp.float32)   # NCHW
    eps = jax.random.normal(k_eps, (BATCH, LATENT), jnp.float32)     # rsample noise
    params = init_params(k_p, INPUT_SIZE, ENC_HIDDEN, DEC_HIDDEN, LATENT)
    kparams = prepare_kernel_params(params, LATENT)

    x_recon, mu, var = smvae_lognormal_forward(
        x_img, eps, kparams, input_size=INPUT_SIZE, latent_size=LATENT)
    jax.block_until_ready((x_recon, mu, var))

    assert x_recon.shape == (BATCH, INPUT_SIZE)
    assert mu.shape == (BATCH, LATENT)
    assert var.shape == (BATCH, LATENT)
    assert bool(jnp.all(x_recon <= 1.0 + 1e-6))
    assert bool(jnp.all(var > 0.0))

    # Correctness vs. pure-JAX f32 reference (bf16 matmuls -> loose tolerance)
    xr_ref, mu_ref, var_ref = reference_forward(
        x_img, eps, params, input_size=INPUT_SIZE, latent_size=LATENT)
    assert bool(jnp.allclose(x_recon, xr_ref, atol=5e-2, rtol=5e-2))
    assert bool(jnp.allclose(mu, mu_ref, atol=5e-2, rtol=5e-2))
    assert bool(jnp.allclose(var, var_ref, atol=5e-2, rtol=5e-2))

    print("KERNEL_OK")
</pallas_src>

<mosaic_0001>
module attributes {stable_mosaic.version = 11 : i64} {
  func.func @_smvae_kernel(%arg0: i32, %arg1: memref<16x64xbf16, #tpu.memory_space<vmem>>, %arg2: memref<16x10xf32, #tpu.memory_space<vmem>>, %arg3: memref<64x128xbf16, #tpu.memory_space<vmem>>, %arg4: memref<1x128xf32, #tpu.memory_space<vmem>>, %arg5: memref<128x32xbf16, #tpu.memory_space<vmem>>, %arg6: memref<1x32xf32, #tpu.memory_space<vmem>>, %arg7: memref<32x20xbf16, #tpu.memory_space<vmem>>, %arg8: memref<1x20xf32, #tpu.memory_space<vmem>>, %arg9: memref<10x32xbf16, #tpu.memory_space<vmem>>, %arg10: memref<1x32xf32, #tpu.memory_space<vmem>>, %arg11: memref<32x128xbf16, #tpu.memory_space<vmem>>, %arg12: memref<1x128xf32, #tpu.memory_space<vmem>>, %arg13: memref<128x64xbf16, #tpu.memory_space<vmem>>, %arg14: memref<1x64xf32, #tpu.memory_space<vmem>>, %arg15: memref<16x64xf32, #tpu.memory_space<vmem>>, %arg16: memref<16x20xf32, #tpu.memory_space<vmem>>) attributes {dimension_semantics = [#tpu.dimension_semantics<parallel>], iteration_bounds = array<i64: 1>, scalar_prefetch = 0 : i64, scratch_operands = 0 : i64, tpu.core_type = #tpu.core_type<tc>, window_params = [{transform_indices = @transform_0, window_bounds = array<i64: 16, 64>}, {transform_indices = @transform_1, window_bounds = array<i64: 16, 10>}, {pipeline_mode = #tpu.pipeline_mode<synchronous>, transform_indices = @transform_2, window_bounds = array<i64: 64, 128>}, {pipeline_mode = #tpu.pipeline_mode<synchronous>, transform_indices = @transform_3, window_bounds = array<i64: 1, 128>}, {pipeline_mode = #tpu.pipeline_mode<synchronous>, transform_indices = @transform_4, window_bounds = array<i64: 128, 32>}, {pipeline_mode = #tpu.pipeline_mode<synchronous>, transform_indices = @transform_5, window_bounds = array<i64: 1, 32>}, {pipeline_mode = #tpu.pipeline_mode<synchronous>, transform_indices = @transform_6, window_bounds = array<i64: 32, 20>}, {pipeline_mode = #tpu.pipeline_mode<synchronous>, transform_indices = @transform_7, window_bounds = array<i64: 1, 20>}, {pipeline_mode = #tpu.pipeline_mode<synchronous>, transform_indices = @transform_8, window_bounds = array<i64: 10, 32>}, {pipeline_mode = #tpu.pipeline_mode<synchronous>, transform_indices = @transform_9, window_bounds = array<i64: 1, 32>}, {pipeline_mode = #tpu.pipeline_mode<synchronous>, transform_indices = @transform_10, window_bounds = array<i64: 32, 128>}, {pipeline_mode = #tpu.pipeline_mode<synchronous>, transform_indices = @transform_11, window_bounds = array<i64: 1, 128>}, {pipeline_mode = #tpu.pipeline_mode<synchronous>, transform_indices = @transform_12, window_bounds = array<i64: 128, 64>}, {pipeline_mode = #tpu.pipeline_mode<synchronous>, transform_indices = @transform_13, window_bounds = array<i64: 1, 64>}, {transform_indices = @transform_14, window_bounds = array<i64: 16, 64>}, {transform_indices = @transform_15, window_bounds = array<i64: 16, 20>}]} {
    %c0 = arith.constant 0 : index
    %c0_0 = arith.constant 0 : index
    %0 = vector.load %arg1[%c0, %c0_0] : memref<16x64xbf16, #tpu.memory_space<vmem>>, vector<16x64xbf16>
    %c0_1 = arith.constant 0 : index
    %c0_2 = arith.constant 0 : index
    %1 = vector.load %arg3[%c0_1, %c0_2] : memref<64x128xbf16, #tpu.memory_space<vmem>>, vector<64x128xbf16>
    %cst = arith.constant dense<0.000000e+00> : vector<16x128xf32>
    %2 = tpu.matmul %0, %1, %cst {dimension_numbers = #tpu.dot_dimension_numbers<[1], [0], [0], [1], [0, 0, 1, 1], [], []>} : vector<16x64xbf16>, vector<64x128xbf16>, vector<16x128xf32> -> vector<16x128xf32>
    %c0_3 = arith.constant 0 : index
    %c0_4 = arith.constant 0 : index
    %3 = vector.load %arg4[%c0_3, %c0_4] : memref<1x128xf32, #tpu.memory_space<vmem>>, vector<1x128xf32>
    %4 = vector.broadcast %3 : vector<1x128xf32> to vector<16x128xf32>
    %5 = arith.addf %2, %4 : vector<16x128xf32>
    %cst_5 = arith.constant 0.000000e+00 : f32
    %6 = vector.broadcast %cst_5 : f32 to vector<16x128xf32>
    %7 = arith.maximumf %5, %6 : vector<16x128xf32>
    %8 = arith.truncf %7 : vector<16x128xf32> to vector<16x128xbf16>
    %c0_6 = arith.constant 0 : index
    %c0_7 = arith.constant 0 : index
    %9 = vector.load %arg5[%c0_6, %c0_7] : memref<128x32xbf16, #tpu.memory_space<vmem>>, vector<128x32xbf16>
    %cst_8 = arith.constant dense<0.000000e+00> : vector<16x32xf32>
    %10 = tpu.matmul %8, %9, %cst_8 {dimension_numbers = #tpu.dot_dimension_numbers<[1], [0], [0], [1], [0, 0, 1, 1], [], []>} : vector<16x128xbf16>, vector<128x32xbf16>, vector<16x32xf32> -> vector<16x32xf32>
    %c0_9 = arith.constant 0 : index
    %c0_10 = arith.constant 0 : index
    %11 = vector.load %arg6[%c0_9, %c0_10] : memref<1x32xf32, #tpu.memory_space<vmem>>, vector<1x32xf32>
    %12 = vector.broadcast %11 : vector<1x32xf32> to vector<16x32xf32>
    %13 = arith.addf %10, %12 : vector<16x32xf32>
    %cst_11 = arith.constant 0.000000e+00 : f32
    %14 = vector.broadcast %cst_11 : f32 to vector<16x32xf32>
    %15 = arith.maximumf %13, %14 : vector<16x32xf32>
    %16 = arith.truncf %15 : vector<16x32xf32> to vector<16x32xbf16>
    %c0_12 = arith.constant 0 : index
    %c0_13 = arith.constant 0 : index
    %17 = vector.load %arg7[%c0_12, %c0_13] : memref<32x20xbf16, #tpu.memory_space<vmem>>, vector<32x20xbf16>
    %cst_14 = arith.constant dense<0.000000e+00> : vector<16x20xf32>
    %18 = tpu.matmul %16, %17, %cst_14 {dimension_numbers = #tpu.dot_dimension_numbers<[1], [0], [0], [1], [0, 0, 1, 1], [], []>} : vector<16x32xbf16>, vector<32x20xbf16>, vector<16x20xf32> -> vector<16x20xf32>
    %c0_15 = arith.constant 0 : index
    %c0_16 = arith.constant 0 : index
    %19 = vector.load %arg8[%c0_15, %c0_16] : memref<1x20xf32, #tpu.memory_space<vmem>>, vector<1x20xf32>
    %20 = vector.broadcast %19 : vector<1x20xf32> to vector<16x20xf32>
    %21 = arith.addf %18, %20 : vector<16x20xf32>
    %cst_17 = arith.constant 5.000000e-01 : f32
    %22 = vector.broadcast %cst_17 : f32 to vector<16x20xf32>
    %23 = arith.mulf %22, %21 : vector<16x20xf32>
    %24 = math.exp %23 : vector<16x20xf32>
    %25 = vector.extract_strided_slice %21 {offsets = [0, 0], sizes = [16, 10], strides = [1, 1]} : vector<16x20xf32> to vector<16x10xf32>
    %26 = vector.extract_strided_slice %24 {offsets = [0, 10], sizes = [16, 10], strides = [1, 1]} : vector<16x20xf32> to vector<16x10xf32>
    %27 = tpu.iota {dimensions = array<i32: 1>} : vector<16x20xi32>
    %c10_i32 = arith.constant 10 : i32
    %28 = vector.broadcast %c10_i32 : i32 to vector<16x20xi32>
    %29 = arith.cmpi slt, %27, %28 : vector<16x20xi32>
    %30 = arith.select %29, %21, %24 : vector<16x20xi1>, vector<16x20xf32>
    %c0_18 = arith.constant 0 : index
    %c0_19 = arith.constant 0 : index
    %31 = vector.load %arg16[%c0_18, %c0_19] : memref<16x20xf32, #tpu.memory_space<vmem>>, vector<16x20xf32>
    tpu.vector_store %arg16[%c0_18, %c0_19], %30 {strides = array<i32>} : memref<16x20xf32, #tpu.memory_space<vmem>>, vector<16x20xf32>,
    %c0_20 = arith.constant 0 : index
    %c0_21 = arith.constant 0 : index
    %32 = vector.load %arg2[%c0_20, %c0_21] : memref<16x10xf32, #tpu.memory_space<vmem>>, vector<16x10xf32>
    %33 = arith.mulf %26, %32 : vector<16x10xf32>
    %34 = arith.addf %25, %33 : vector<16x10xf32>
    %35 = vector.extract_strided_slice %34 {offsets = [0, 9], sizes = [16, 1], strides = [1, 1]} : vector<16x10xf32> to vector<16x1xf32>
    %36 = math.exp %35 : vector<16x1xf32>
    %37 = arith.truncf %34 : vector<16x10xf32> to vector<16x10xbf16>
    %c0_22 = arith.constant 0 : index
    %c0_23 = arith.constant 0 : index
    %38 = vector.load %arg9[%c0_22, %c0_23] : memref<10x32xbf16, #tpu.memory_space<vmem>>, vector<10x32xbf16>
    %cst_24 = arith.constant dense<0.000000e+00> : vector<16x32xf32>
    %39 = tpu.matmul %37, %38, %cst_24 {dimension_numbers = #tpu.dot_dimension_numbers<[1], [0], [0], [1], [0, 0, 1, 1], [], []>} : vector<16x10xbf16>, vector<10x32xbf16>, vector<16x32xf32> -> vector<16x32xf32>
    %c0_25 = arith.constant 0 : index
    %c0_26 = arith.constant 0 : index
    %40 = vector.load %arg10[%c0_25, %c0_26] : memref<1x32xf32, #tpu.memory_space<vmem>>, vector<1x32xf32>
    %41 = vector.broadcast %40 : vector<1x32xf32> to vector<16x32xf32>
    %42 = arith.addf %39, %41 : vector<16x32xf32>
    %cst_27 = arith.constant 0.000000e+00 : f32
    %43 = vector.broadcast %cst_27 : f32 to vector<16x32xf32>
    %44 = arith.maximumf %42, %43 : vector<16x32xf32>
    %45 = arith.truncf %44 : vector<16x32xf32> to vector<16x32xbf16>
    %c0_28 = arith.constant 0 : index
    %c0_29 = arith.constant 0 : index
    %46 = vector.load %arg11[%c0_28, %c0_29] : memref<32x128xbf16, #tpu.memory_space<vmem>>, vector<32x128xbf16>
    %cst_30 = arith.constant dense<0.000000e+00> : vector<16x128xf32>
    %47 = tpu.matmul %45, %46, %cst_30 {dimension_numbers = #tpu.dot_dimension_numbers<[1], [0], [0], [1], [0, 0, 1, 1], [], []>} : vector<16x32xbf16>, vector<32x128xbf16>, vector<16x128xf32> -> vector<16x128xf32>
    %c0_31 = arith.constant 0 : index
    %c0_32 = arith.constant 0 : index
    %48 = vector.load %arg12[%c0_31, %c0_32] : memref<1x128xf32, #tpu.memory_space<vmem>>, vector<1x128xf32>
    %49 = vector.broadcast %48 : vector<1x128xf32> to vector<16x128xf32>
    %50 = arith.addf %47, %49 : vector<16x128xf32>
    %cst_33 = arith.constant 0.000000e+00 : f32
    %51 = vector.broadcast %cst_33 : f32 to vector<16x128xf32>
    %52 = arith.maximumf %50, %51 : vector<16x128xf32>
    %53 = arith.truncf %52 : vector<16x128xf32> to vector<16x128xbf16>
    %c0_34 = arith.constant 0 : index
    %c0_35 = arith.constant 0 : index
    %54 = vector.load %arg13[%c0_34, %c0_35] : memref<128x64xbf16, #tpu.memory_space<vmem>>, vector<128x64xbf16>
    %cst_36 = arith.constant dense<0.000000e+00> : vector<16x64xf32>
    %55 = tpu.matmul %53, %54, %cst_36 {dimension_numbers = #tpu.dot_dimension_numbers<[1], [0], [0], [1], [0, 0, 1, 1], [], []>} : vector<16x128xbf16>, vector<128x64xbf16>, vector<16x64xf32> -> vector<16x64xf32>
    %c0_37 = arith.constant 0 : index
    %c0_38 = arith.constant 0 : index
    %56 = vector.load %arg14[%c0_37, %c0_38] : memref<1x64xf32, #tpu.memory_space<vmem>>, vector<1x64xf32>
    %57 = vector.broadcast %56 : vector<1x64xf32> to vector<16x64xf32>
    %58 = arith.addf %55, %57 : vector<16x64xf32>
    %cst_39 = arith.constant 0.000000e+00 : f32
    %59 = vector.broadcast %cst_39 : f32 to vector<16x64xf32>
    %60 = arith.subf %59, %58 : vector<16x64xf32>
    %61 = math.exp %60 : vector<16x64xf32>
    %cst_40 = arith.constant 1.000000e+00 : f32
    %62 = vector.broadcast %cst_40 : f32 to vector<16x64xf32>
    %63 = arith.addf %62, %61 : vector<16x64xf32>
    %64 = tpu.reciprocal %63 {approx = true} : vector<16x64xf32> -> vector<16x64xf32>
    %65 = vector.broadcast %36 : vector<16x1xf32> to vector<16x64xf32>
    %66 = arith.mulf %64, %65 : vector<16x64xf32>
    %cst_41 = arith.constant 1.000000e+00 : f32
    %67 = vector.broadcast %cst_41 : f32 to vector<16x64xf32>
    %68 = arith.minimumf %66, %67 : vector<16x64xf32>
    %c0_42 = arith.constant 0 : index
    %c0_43 = arith.constant 0 : index
    %69 = vector.load %arg15[%c0_42, %c0_43] : memref<16x64xf32, #tpu.memory_space<vmem>>, vector<16x64xf32>
    tpu.vector_store %arg15[%c0_42, %c0_43], %68 {strides = array<i32>} : memref<16x64xf32, #tpu.memory_space<vmem>>, vector<16x64xf32>,
    return
  }
  func.func @transform_0(%arg0: i32) -> (i32, i32) {
    %c0_i32 = arith.constant 0 : i32
    %c0_i32_0 = arith.constant 0 : i32
    return %arg0, %c0_i32 : i32, i32
  }
  func.func @transform_1(%arg0: i32) -> (i32, i32) {
    %c0_i32 = arith.constant 0 : i32
    %c0_i32_0 = arith.constant 0 : i32
    return %arg0, %c0_i32 : i32, i32
  }
  func.func @transform_2(%arg0: i32) -> (i32, i32) {
    %c0_i32 = arith.constant 0 : i32
    %c0_i32_0 = arith.constant 0 : i32
    %c0_i32_1 = arith.constant 0 : i32
    return %c0_i32, %c0_i32_0 : i32, i32
  }
  func.func @transform_3(%arg0: i32) -> (i32, i32) {
    %c0_i32 = arith.constant 0 : i32
    %c0_i32_0 = arith.constant 0 : i32
    %c0_i32_1 = arith.constant 0 : i32
    return %c0_i32, %c0_i32_0 : i32, i32
  }
  func.func @transform_4(%arg0: i32) -> (i32, i32) {
    %c0_i32 = arith.constant 0 : i32
    %c0_i32_0 = arith.constant 0 : i32
    %c0_i32_1 = arith.constant 0 : i32
    return %c0_i32, %c0_i32_0 : i32, i32
  }
  func.func @transform_5(%arg0: i32) -> (i32, i32) {
    %c0_i32 = arith.constant 0 : i32
    %c0_i32_0 = arith.constant 0 : i32
    %c0_i32_1 = arith.constant 0 : i32
    return %c0_i32, %c0_i32_0 : i32, i32
  }
  func.func @transform_6(%arg0: i32) -> (i32, i32) {
    %c0_i32 = arith.constant 0 : i32
    %c0_i32_0 = arith.constant 0 : i32
    %c0_i32_1 = arith.constant 0 : i32
    return %c0_i32, %c0_i32_0 : i32, i32
  }
  func.func @transform_7(%arg0: i32) -> (i32, i32) {
    %c0_i32 = arith.constant 0 : i32
    %c0_i32_0 = arith.constant 0 : i32
    %c0_i32_1 = arith.constant 0 : i32
    return %c0_i32, %c0_i32_0 : i32, i32
  }
  func.func @transform_8(%arg0: i32) -> (i32, i32) {
    %c0_i32 = arith.constant 0 : i32
    %c0_i32_0 = arith.constant 0 : i32
    %c0_i32_1 = arith.constant 0 : i32
    return %c0_i32, %c0_i32_0 : i32, i32
  }
  func.func @transform_9(%arg0: i32) -> (i32, i32) {
    %c0_i32 = arith.constant 0 : i32
    %c0_i32_0 = arith.constant 0 : i32
    %c0_i32_1 = arith.constant 0 : i32
    return %c0_i32, %c0_i32_0 : i32, i32
  }
  func.func @transform_10(%arg0: i32) -> (i32, i32) {
    %c0_i32 = arith.constant 0 : i32
    %c0_i32_0 = arith.constant 0 : i32
    %c0_i32_1 = arith.constant 0 : i32
    return %c0_i32, %c0_i32_0 : i32, i32
  }
  func.func @transform_11(%arg0: i32) -> (i32, i32) {
    %c0_i32 = arith.constant 0 : i32
    %c0_i32_0 = arith.constant 0 : i32
    %c0_i32_1 = arith.constant 0 : i32
    return %c0_i32, %c0_i32_0 : i32, i32
  }
  func.func @transform_12(%arg0: i32) -> (i32, i32) {
    %c0_i32 = arith.constant 0 : i32
    %c0_i32_0 = arith.constant 0 : i32
    %c0_i32_1 = arith.constant 0 : i32
    return %c0_i32, %c0_i32_0 : i32, i32
  }
  func.func @transform_13(%arg0: i32) -> (i32, i32) {
    %c0_i32 = arith.constant 0 : i32
    %c0_i32_0 = arith.constant 0 : i32
    %c0_i32_1 = arith.constant 0 : i32
    return %c0_i32, %c0_i32_0 : i32, i32
  }
  func.func @transform_14(%arg0: i32) -> (i32, i32) {
    %c0_i32 = arith.constant 0 : i32
    %c0_i32_0 = arith.constant 0 : i32
    return %arg0, %c0_i32 : i32, i32
  }
  func.func @transform_15(%arg0: i32) -> (i32, i32) {
    %c0_i32 = arith.constant 0 : i32
    %c0_i32_0 = arith.constant 0 : i32
    return %arg0, %c0_i32 : i32, i32
  }
}

</mosaic_0001>

<bundles_post_ra>
// kernel: tpu_custom_call.1
= control target key start
LH: loop header
LB: loop body
LE: loop exit
PB: predicated region body
PF: predicated region fallthrough
CT: control target
= control target key end

     0   :  { %21 = vsyncpa [#allocation3], 0  ;;  %s926_s0 = inlined_call_operand.vmem [shape: bf16[16,64], index: 0, kind: input, shape index: {}]   ;;  %s927_s1 = inlined_call_operand.vmem [shape: f32[16,10], index: 1, kind: input, shape index: {}]   ;;  %s928_s2 = inlined_call_operand.vmem [shape: bf16[64,128], index: 2, kind: input, shape index: {}]   ;;  %s929_s3 = inlined_call_operand.vmem [shape: f32[1,128], index: 3, kind: input, shape index: {}]   ;;  %s930_s4 = inlined_call_operand.vmem [shape: bf16[128,32], index: 4, kind: input, shape index: {}]   ;;  %s931_s5 = inlined_call_operand.vmem [shape: f32[1,32], index: 5, kind: input, shape index: {}]   ;;  %s932_s6 = inlined_call_operand.vmem [shape: bf16[32,20], index: 6, kind: input, shape index: {}]   ;;  %s933_s7 = inlined_call_operand.vmem [shape: f32[1,20], index: 7, kind: input, shape index: {}]   ;;  %s934_s8 = inlined_call_operand.vmem [shape: bf16[10,32], index: 8, kind: input, shape index: {}]   ;;  %s935_s9 = inlined_call_operand.vmem [shape: f32[1,32], index: 9, kind: input, shape index: {}]   ;;  %s936_s10 = inlined_call_operand.vmem [shape: bf16[32,128], index: 10, kind: input, shape index: {}]   ;;  %s937_s11 = inlined_call_operand.vmem [shape: f32[1,128], index: 11, kind: input, shape index: {}]   ;;  %s938_s12 = inlined_call_operand.vmem [shape: bf16[128,64], index: 12, kind: input, shape index: {}]   ;;  %s939_s13 = inlined_call_operand.vmem [shape: f32[1,64], index: 13, kind: input, shape index: {}]   ;;  %s940_s14 = inlined_call_operand.hbm [shape: f32[16,64], index: 14, kind: output, shape index: {0}]   ;;  %s941_s15 = inlined_call_operand.hbm [shape: f32[16,20], index: 15, kind: output, shape index: {1}]  }
   0x1   :  { %v612_v0 = vld [vmem:[%s928_s2 + $0x18] sm:$0xff]  ;;  %v611_v2 = vld [vmem:[%s928_s2 + $0x10] sm:$0xff] }
   0x2   :  { %v620_v1 = vld [vmem:[%s930_s4 + $0x38] sm:$0xff]  ;;  %103 = vmatpush.bf16.msra.mxu0 %v612_v0  ;;  %v619_v3 = vld [vmem:[%s930_s4 + $0x30] sm:$0xff] }
   0x3   :  { %184 = vmatpush.bf16.msra.mxu1 %v620_v1 }
   0x4   :  { %22 = vsyncpa [#allocation5], 0  ;;  %v610_v4 = vld [vmem:[%s928_s2 + $0x8] sm:$0xff]  ;;  %v609_v6 = vld [vmem:[%s928_s2] sm:$0xff]  ;;  %vm95_vm0 = vcmask 523264   ;;  %s717_s19 = smov 10   ;;  %v245_v37 = vlaneseq }
   0x5   :  { %v618_v5 = vld [vmem:[%s930_s4 + $0x28] sm:$0xff]  ;;  %v617_v7 = vld [vmem:[%s930_s4 + $0x20] sm:$0xff]  ;;  %v616_v9 = vld [vmem:[%s930_s4 + $0x18] sm:$0xff]  ;;  %vm221_vm1 = vcmask 261120   ;;  %vm250_vm3 = vcmask 162816   ;;  %vm295_vm4 = vcmask 1044480  }
   0x6   :  { %104 = vmatpush.bf16.msra.mxu0 %v611_v2  ;;  %v608_v8 = vld [vmem:[%s926_s0] sm:$0xff]  ;;  %v615_v10 = vld [vmem:[%s930_s4 + $0x10] sm:$0xff]  ;;  %v614_v11 = vld [vmem:[%s930_s4 + $0x8] sm:$0xff]  ;;  %v246_v39 = vand.u32 127, %v245_v37  ;;  %v719_v56 = vmov 9   ;;  %vm291_vm5 = vcmask 80896  }
   0x7   :  { %185 = vmatpush.bf16.msra.mxu1 %v619_v3  ;;  %v613_v12 = vld [vmem:[%s930_s4] sm:$0xff]  ;;  %v622_v13 = vld [vmem:[%s932_s6 + $0x8] sm:$0xff]  ;;  %641 = vset.pattern.permute.xlu2 %v719_v56  ;;  %s720_s23 = smov [#allocation4]   ;;  %s483_s0 = sshll.u32 %s941_s15, 4  ;;  %s484_s0 = int_to_ptr.hbm [resolvable:$true] %s483_s0 }
   0x8   :  { %v643_v15 = vld [vmem:[%s929_s3] ss:$0 sm:$0xff]  ;;  %v254_v24 = vld [vmem:[%s927_s1 + $0x8] sm:$0xff]  ;;  %vm247_vm2 = vcmp.lt.s32.totalorder %v246_v39, 10  ;;  %v623_v53 = vld [vmem:[%s934_s8] sm:$0x10]  ;;  %642 = vset.pattern.permute.xlu0 %v719_v56 }
   0x9   :  { %v621_v22 = vld [vmem:[%s932_s6] sm:$0xff]  ;;  %v625_v2 = vld [vmem:[%s936_s10 + $0x8] sm:$0xff]  ;;  %s481_s24 = sshll.u32 %s720_s23, 4  ;;  %s722_s26 = smov 8   ;;  %s482_s24 = int_to_ptr.vmem [resolvable:$true] %s481_s24 }
   0xa   :  { %105 = vmatpush.bf16.msra.mxu0 %v610_v4  ;;  %v253_v23 = vld [vmem:[%s927_s1] sm:$0xff]  ;;  %s718_s1 = smov 118   ;;  %v633_v4 = vld [vmem:[%s938_s12 + $0x38] sm:$0xff]  ;;  %s470_s30 = sshll.u32 %s940_s14, 4  ;;  %s471_s30 = int_to_ptr.hbm [resolvable:$true] %s470_s30 }
   0xb   :  { %186 = vmatpush.bf16.msra.mxu1 %v618_v5  ;;  %257 = vrot.lane.b32.xlu0 %v253_v23, %s717_s19  ;;  %v644_v26 = vld [vmem:[%s931_s5] ss:$0 sm:$0xff]  ;;  %v632_v5 = vld [vmem:[%s938_s12 + $0x30] sm:$0xff] }
   0xc   :  { %v645_v33 = vld [vmem:[%s933_s7] ss:$0 sm:$0xff]  ;;  %424 = vmatpush.bf16.msra.mxu2 %v633_v4 }
   0xd   :  { %v564_v52 = vld [vmem:[%s934_s8] sm:$0xf] }
   0xe   :  { %106 = vmatpush.bf16.msra.mxu0 %v609_v6  ;;  %v565_v54 = vor.u32 %v623_v53, %v564_v52  ;;  %v624_v3 = vld [vmem:[%s936_s10] sm:$0xff]  ;;  %v631_v6 = vld [vmem:[%s938_s12 + $0x28] sm:$0xff] }
   0xf   :  { %187 = vmatpush.bf16.msra.mxu1 %v617_v7  ;;  %v630_v7 = vld [vmem:[%s938_s12 + $0x20] sm:$0xff] }
  0x10   :  { %v297_v55 = vsel %vm295_vm4, %v565_v54, 0  ;;  %425 = vmatpush.bf16.msra.mxu2 %v632_v5 }
  0x11   :  { %520 = vmatmul.msk.bf16.vlgmr.msra.gmra.mxu0 %vm95_vm0, %v608_v8  ;;  %306 = vmatpush.bf16.msra.mxu3 %v297_v55 }
  0x12   :  { %231 = vmatpush.bf16.msrb.mxu0 %v622_v13 }
  0x13   :  { %188 = vmatpush.bf16.msra.mxu1 %v616_v9  ;;  %259 = vrot.lane.b32.xlu0 %v254_v24, %s717_s19  ;;  %v646_v9 = vld [vmem:[%s935_s9] ss:$0 sm:$0xff] }
  0x14   :  { %426 = vmatpush.bf16.msra.mxu2 %v631_v6 }
  0x15   :  { %345 = vmatpush.bf16.msrb.mxu3 %v625_v2 }
  0x16   :  { %232 = vmatpush.bf16.msrb.mxu0 %v621_v22 }
  0x17   :  { %189 = vmatpush.bf16.msra.mxu1 %v615_v10 }
  0x18   :  { %427 = vmatpush.bf16.msra.mxu2 %v630_v7 }
  0x19   :  { %346 = vmatpush.bf16.msrb.mxu3 %v624_v3 }
  0x1b   :  { %190 = vmatpush.bf16.msra.mxu1 %v614_v11 }
  0x1f   :  { %191 = vmatpush.bf16.msra.mxu1 %v613_v12 }
  0x7d   :  { %v258_v42 = vpop.permute.xlu0 %257 }
  0x85   :  { %v260_v48 = vpop.permute.xlu0 %259 }
  0x8e   :  { %v108_v14 = vpop.f32.mrf.mxu0 }
  0x8f   :  { %v109_v16 = vadd.f32 %v643_v15, %v108_v14 }
  0x91   :  { %v113_v19 = vmax.f32 %v109_v16, 0.0  ;;  %v629_v16 = vld [vmem:[%s938_s12 + $0x18] sm:$0xff] }
  0x92   :  { %428 = vmatpush.bf16.msra.mxu2 %v629_v16 }
  0x96   :  { %v110_v17 = vpop.f32.mrf.mxu0 }
  0x97   :  { %v111_v18 = vadd.f32 %v643_v15, %v110_v17  ;;  %v628_v17 = vld [vmem:[%s938_s12 + $0x10] sm:$0xff] }
  0x98   :  { %429 = vmatpush.bf16.msra.mxu2 %v628_v17 }
  0x99   :  { %v114_v20 = vmax.f32 %v111_v18, 0.0  ;;  %v627_v18 = vld [vmem:[%s938_s12 + $0x8] sm:$0xff] }
  0x9b   :  { %v115_v21 = vpack.c.bf16 %v114_v20, %v113_v19  ;;  %v626_v19 = vld [vmem:[%s938_s12] sm:$0xff]  ;;  %s721_s12 = smov 128  }
  0x9c   :  { %430 = vmatpush.bf16.msra.mxu2 %v627_v18 }
  0x9d   :  { %192 = vmatmul.bf16.vlgmr.msra.gmra.mxu1 %v115_v21  ;;  %v647_v21 = vld [vmem:[%s937_s11] ss:$0 sm:$0xff] }
  0xa0   :  { %431 = vmatpush.bf16.msra.mxu2 %v626_v19 }
 0x11a   :  { %v193_v25 = vpop.f32.mrf.mxu1 }
 0x11b   :  { %v194_v27 = vadd.f32 %v644_v26, %v193_v25 }
 0x11d   :  { %v198_v30 = vmax.f32 %v194_v27, 0.0 }
 0x122   :  { %v195_v28 = vpop.f32.mrf.mxu1 }
 0x123   :  { %v196_v29 = vadd.f32 %v644_v26, %v195_v28  ;;  %v648_v28 = vld [vmem:[%s939_s13] ss:$0 sm:$0xff]  ;;  %s723_s13 = smov [#allocation2]  }
 0x124   :  { %s468_s15 = sshll.u32 %s723_s13, 4  ;;  %s469_s15 = int_to_ptr.vmem [resolvable:$true] %s468_s15 }
 0x125   :  { %v199_v31 = vmax.f32 %v196_v29, 0.0 }
 0x127   :  { %v200_v32 = vpack.c.bf16 %v199_v31, %v198_v30 }
 0x129   :  { %561 = vmatmul.msk.bf16.vlgmr.msrb.gmra.mxu0 %vm221_vm1, %v200_v32 }
 0x1a6   :  { %v234_v34 = vpop.f32.mrf.mxu0 }
 0x1a7   :  { %v235_v35 = vadd.f32 %v645_v33, %v234_v34 }
 0x1a9   :  { %v239_v36 = vmul.f32 0.5, %v235_v35 }
 0x1ab   :  { %v241_v38 = vmul.f32 1.442695, %v239_v36 }
 0x1ad   :  { %649 = vpow2.f32 %v241_v38 }
 0x1ae   :  { %v236_v40 = vpop.f32.mrf.mxu0 }
 0x1af   :  { %v237_v41 = vadd.f32 %v645_v33, %v236_v40 }
 0x1b1   :  { %v240_v43 = vmul.f32 0.5, %v237_v41 }
 0x1b3   :  { %v650_v44 = vpop.eup %649  ;;  %v243_v45 = vmul.f32 1.442695, %v240_v43 }
 0x1b4   :  { %v248_v46 = vsel %vm247_vm2, %v235_v35, %v650_v44  ;;  %v263_v47 = vmul.f32 %v650_v44, %v258_v42 }
 0x1b5   :  { %251 = vst.msk [vmem:[#allocation4] sm:$0xff] %vm250_vm3, %v248_v46  ;;  %651 = vpow2.f32 %v243_v45 }
 0x1b6   :  { %267 = vrot.lane.b32.xlu1 %v263_v47, %s718_s1 }
 0x1bb   :  { %v652_v49 = vpop.eup %651 }
 0x1bc   :  { %v249_v50 = vsel %vm247_vm2, %v237_v41, %v652_v49  ;;  %v264_v51 = vmul.f32 %v652_v49, %v260_v48 }
 0x1bd   :  { %252 = vst.msk [vmem:[#allocation4 + $0x8] sm:$0xff] %vm250_vm3, %v249_v50 }
 0x1be   :  { %269 = vrot.lane.b32.xlu1 %v264_v51, %s718_s1 }
 0x1bf   :  { %489 = dma.vmem_to_hbm [thread:$0]  %s482_s24, 256, %s484_s0, [#allocation5], %s721_s12, %s721_s12, %s722_s26  }
 0x228   :  { %v268_v57 = vpop.permute.xlu1 %267 }
 0x229   :  { %v273_v58 = vadd.f32 %v268_v57, %v235_v35 }
 0x22b   :  { %v275_v59 = vmul.f32 1.442695, %v273_v58 }
 0x22d   :  { %653 = vpow2.f32 %v275_v59 }
 0x230   :  { %v270_v60 = vpop.permute.xlu1 %269 }
 0x231   :  { %v274_v61 = vadd.f32 %v270_v60, %v237_v41 }
 0x233   :  { %v654_v62 = vpop.eup %653  ;;  %v277_v63 = vmul.f32 1.442695, %v274_v61  ;;  %v279_v0 = vpack.c.bf16 %v274_v61, %v273_v58 }
 0x234   :  { %450 = vperm.xlu2 %641, %v654_v62  }
 0x235   :  { %655 = vpow2.f32 %v277_v63  ;;  %566 = vmatmul.msk.bf16.vlgmr.msra.gmra.mxu3 %vm291_vm5, %v279_v0 }
 0x23b   :  { %v656_v1 = vpop.eup %655 }
 0x23c   :  { %455 = vperm.xlu2 %641, %v656_v1  }
 0x28e   :  { %v451_v39 = vpop.permute.xlu2 %450 }
 0x296   :  { %v456_v46 = vpop.permute.xlu2 %455 }
 0x2b8   :  { %v308_v8 = vpop.f32.mrf.mxu3 }
 0x2b9   :  { %v309_v10 = vadd.f32 %v646_v9, %v308_v8 }
 0x2bb   :  { %v313_v13 = vmax.f32 %v309_v10, 0.0 }
 0x2c0   :  { %v310_v11 = vpop.f32.mrf.mxu3 }
 0x2c1   :  { %v311_v12 = vadd.f32 %v646_v9, %v310_v11 }
 0x2c3   :  { %v314_v14 = vmax.f32 %v311_v12, 0.0 }
 0x2c5   :  { %v315_v15 = vpack.c.bf16 %v314_v14, %v313_v13 }
 0x2c7   :  { %575 = vmatmul.msk.bf16.vlgmr.msrb.gmra.mxu3 %vm221_vm1, %v315_v15 }
 0x34a   :  { %v348_v20 = vpop.f32.mrf.mxu3 }
 0x34b   :  { %v349_v22 = vadd.f32 %v647_v21, %v348_v20 }
 0x34d   :  { %v353_v25 = vmax.f32 %v349_v22, 0.0 }
 0x352   :  { %v350_v23 = vpop.f32.mrf.mxu3 }
 0x353   :  { %v351_v24 = vadd.f32 %v647_v21, %v350_v23 }
 0x355   :  { %v354_v26 = vmax.f32 %v351_v24, 0.0 }
 0x357   :  { %v355_v27 = vpack.c.bf16 %v354_v26, %v353_v25 }
 0x359   :  { %432 = vmatmul.bf16.vlgmr.msra.gmra.mxu2 %v355_v27 }
 0x3dc   :  { %v433_v29 = vpop.f32.mrf.mxu2 }
 0x3dd   :  { %v434_v30 = vadd.f32 %v648_v28, %v433_v29 }
 0x3df   :  { %v438_v31 = vsub.f32 0.0, %v434_v30 }
 0x3e1   :  { %v440_v32 = vmul.f32 1.442695, %v438_v31 }
 0x3e3   :  { %657 = vpow2.f32 %v440_v32 }
 0x3e4   :  { %v435_v33 = vpop.f32.mrf.mxu2 }
 0x3e5   :  { %v436_v34 = vadd.f32 %v648_v28, %v435_v33 }
 0x3e7   :  { %v439_v35 = vsub.f32 0.0, %v436_v34 }
 0x3e9   :  { %v658_v36 = vpop.eup %657  ;;  %v442_v37 = vmul.f32 1.442695, %v439_v35 }
 0x3ea   :  { %v444_v38 = vadd.f32 1.0, %v658_v36 }
 0x3eb   :  { %659 = vpow2.f32 %v442_v37 }
 0x3ec   :  { %661 = vrcp.f32 %v444_v38 }
 0x3f1   :  { %v660_v40 = vpop.eup %659 }
 0x3f2   :  { %v662_v41 = vpop.eup %661  ;;  %v445_v42 = vadd.f32 1.0, %v660_v40 }
 0x3f3   :  { %v458_v43 = vmul.f32 %v662_v41, %v451_v39 }
 0x3f4   :  { %663 = vrcp.f32 %v445_v42 }
 0x3f5   :  { %v460_v44 = vmin.f32 %v458_v43, 1.0 }
 0x3f7   :  { %462 = vst.msk [vmem:[#allocation2] sm:$0xff] %vm95_vm0, %v460_v44 }
 0x3fa   :  { %v664_v45 = vpop.eup %663 }
 0x3fb   :  { %v459_v47 = vmul.f32 %v664_v45, %v456_v46 }
 0x3fd   :  { %v461_v48 = vmin.f32 %v459_v47, 1.0 }
 0x3ff   :  { %463 = vst.msk [vmem:[#allocation2 + $0x8] sm:$0xff] %vm95_vm0, %v461_v48 }
 0x400   :  { %476 = dma.vmem_to_hbm [thread:$0]  %s469_s15, 256, %s471_s30, [#allocation3], %s721_s12, %s721_s12, %s722_s26  }
 0x401   :  { %713 = dma.done.wait [#allocation3], 256  }
 0x402   :  { %714 = vsyncadd [#allocation3], 4294967040 }
 0x403   :  { %715 = dma.done.wait [#allocation5], 256  }
 0x404   :  { %716 = vsyncadd [#allocation5], 4294967040 }
 0x405   :  { %498 = vsyncpa [#allocation3], 1 }
 0x406   :  { %499 = vsyncpa [#allocation5], 1 }

</bundles_post_ra>
